<compile_context>
chip_gen: v7x
topology: tpu7x:2x2x1
jax: 0.10.0
libtpu: 0.0.40
codegen_flags: <defaults>
</compile_context>

<pallas_src>
import functools

import jax
import jax.numpy as jnp
from jax.experimental import pallas as pl
from jax.experimental.pallas import tpu as pltpu

_LANE = 128      # lane width (last-dim tiling unit)
_SUBLANE = 8     # f32 sublane width (second-to-last-dim tiling unit)
_PARAM_KEYS = ("w1", "b1", "w2", "b2", "w3", "b3", "w4", "b4", "w5", "b5")


def _round_up(x, m):
    return ((x + m - 1) // m) * m


def _vmem_capacity_bytes():
    """Per-core VMEM capacity (128 MiB on v5e/v6e, 64 MiB on v7x)."""
    try:
        info = pltpu.get_tpu_info()
        cap = getattr(info, "vmem_capacity_bytes", None)
        if cap:
            return int(cap)
    except Exception:
        pass
    return 64 * 1024 * 1024   # conservative fallback = v7x per-TC VMEM


def _mlp_kernel(x_ref,
                w1_ref, b1_ref,
                w2_ref, b2_ref,
                w3_ref, b3_ref,
                w4_ref, b4_ref,
                w5_ref, b5_ref,
                out_ref,
                *, compute_dtype):
    """Whole 5-layer MLP forward for one batch tile, entirely in VMEM.

    NOTE: the layers are deliberately straight-line (1, out) bias adds.  Do NOT
    refactor into an in-kernel loop with per-iteration re-broadcasts — JAX does
    not CSE broadcast_in_dim, so that would multiply VPU broadcast work.
    """
    # PyTorch forward does state.type(torch.FloatTensor) -> cast to f32 here.
    h = x_ref[...].astype(jnp.float32)

    def layer(h, w_ref, b_ref, relu):
        acc = jnp.dot(h.astype(compute_dtype), w_ref[...],
                      preferred_element_type=jnp.float32)
        acc = acc + b_ref[...]
        if relu:
            acc = jnp.maximum(acc, 0.0)
        return acc

    h = layer(h, w1_ref, b1_ref, True)
    h = layer(h, w2_ref, b2_ref, True)
    h = layer(h, w3_ref, b3_ref, True)
    h = layer(h, w4_ref, b4_ref, True)
    q = layer(h, w5_ref, b5_ref, False)     # output layer: no activation
    out_ref[...] = q.astype(out_ref.dtype)  # lane-masked store of out_dims columns


def prepare_dqn_params(params, compute_dtype=jnp.bfloat16):
    """Pad the hidden dim to 128 lanes and cast weights ONCE, outside the hot path.

    params: dict w1..w5 of shape (in, out) (transpose of torch's (out, in)) and
            b1..b5 of shape (1, out).  Input and output feature dims are NOT
            padded (they stay narrow in HBM); only the hidden dim is padded.
    """
    input_dims, hid_dim = params["w1"].shape
    out_dims = params["w5"].shape[1]
    hid_pad = _round_up(hid_dim, _LANE)

    def pad2(a, rows, cols, dtype):
        a = jnp.asarray(a, dtype)
        return jnp.pad(a, ((0, rows - a.shape[0]), (0, cols - a.shape[1])))

    prepared = {
        "w1": pad2(params["w1"], input_dims, hid_pad, compute_dtype),
        "b1": pad2(params["b1"], 1, hid_pad, jnp.float32),
        "w2": pad2(params["w2"], hid_pad, hid_pad, compute_dtype),
        "b2": pad2(params["b2"], 1, hid_pad, jnp.float32),
        "w3": pad2(params["w3"], hid_pad, hid_pad, compute_dtype),
        "b3": pad2(params["b3"], 1, hid_pad, jnp.float32),
        "w4": pad2(params["w4"], hid_pad, hid_pad, compute_dtype),
        "b4": pad2(params["b4"], 1, hid_pad, jnp.float32),
        "w5": pad2(params["w5"], hid_pad, out_dims, compute_dtype),
        "b5": pad2(params["b5"], 1, out_dims, jnp.float32),
        "meta": {"input_dims": input_dims, "hid_dim": hid_dim,
                 "out_dims": out_dims, "hid_pad": hid_pad,
                 "compute_dtype": compute_dtype},
    }
    return prepared


def dqn_forward(state, params, *, batch_tile=None,
                compute_dtype=jnp.bfloat16, vmem_budget_bytes=None):
    """Pallas forward for DeepQNetwork.

    state : (B, input_dims) array (any float dtype; cast to f32 like torch).
    params: either raw params (w1..w5 (in,out), b1..b5 (1,out)) or the output of
            prepare_dqn_params (preferred — hoists padding/casting out of the loop).
    """
    if "meta" not in params:
        params = prepare_dqn_params(params, compute_dtype)
    meta = params["meta"]
    compute_dtype = meta["compute_dtype"]
    input_dims = meta["input_dims"]
    hid_pad = meta["hid_pad"]
    out_dims = meta["out_dims"]

    B, in_d = state.shape
    assert in_d == input_dims, (in_d, input_dims)

    x_item = jnp.dtype(state.dtype).itemsize
    w_item = jnp.dtype(compute_dtype).itemsize
    weight_elems = (input_dims * hid_pad + 3 * hid_pad * hid_pad
                    + hid_pad * out_dims)
    weight_bytes = weight_elems * w_item
    bias_bytes = (4 * hid_pad + out_dims) * 4

    # ---- generation-aware VMEM budget (~48 MiB usable on v7x, ~96 MiB v5e/v6e) ----
    vmem_cap = _vmem_capacity_bytes()
    if vmem_budget_bytes is None:
        vmem_budget_bytes = (vmem_cap * 3) // 4

    def vmem_estimate(bt):
        # Conservative: assumes double-buffered weights even though we request
        # Buffered(1); also accounts for f32 intermediate activations.
        return (2 * bt * input_dims * x_item       # double-buffered input tile
                + 2 * bt * out_dims * 4            # double-buffered output tile
                + 2 * (weight_bytes + bias_bytes)  # resident params
                + 3 * bt * hid_pad * 4)            # f32 intermediates / casts

    # ---- batch tile: big (amortize ~0.35us/step), multiple of 8, >=2 grid steps
    # for large batches (v7x two-TC split), auto-shrunk to the VMEM budget. ----
    B_sub = _round_up(B, _SUBLANE)
    if batch_tile is None:
        batch_tile = 2048
    batch_tile = min(batch_tile, B_sub)
    if B_sub >= 1024:   # only worth a 2nd grid step when per-step work is non-trivial
        batch_tile = min(batch_tile, _round_up((B_sub + 1) // 2, _SUBLANE))
    batch_tile = max(_SUBLANE, _round_up(batch_tile, _SUBLANE))
    while vmem_estimate(batch_tile) > vmem_budget_bytes and batch_tile > _SUBLANE:
        batch_tile = max(_SUBLANE, _round_up(batch_tile // 2, _SUBLANE))

    vmem_limit_bytes = int(min(vmem_cap,
                               max(32 * 1024 * 1024,
                                   vmem_estimate(batch_tile) + 8 * 1024 * 1024)))

    # ---- pad batch rows only (no HBM-side feature padding) ----
    B_pad = _round_up(B, batch_tile)
    pad_rows = B_pad - B
    if pad_rows:
        state = jnp.pad(state, ((0, pad_rows), (0, 0)))
    grid = (B_pad // batch_tile,)

    # Block last dim == full array extent (input_dims / out_dims) is legal under
    # the (8,128) rule and keeps HBM traffic at the true feature widths.
    x_spec = pl.BlockSpec((batch_tile, input_dims), lambda i: (i, 0))
    out_spec = pl.BlockSpec((batch_tile, out_dims), lambda i: (i, 0))

    operands = [state] + [params[k] for k in _PARAM_KEYS]

    flops = 2 * B_pad * weight_elems
    bytes_accessed = (B_pad * input_dims * x_item + B_pad * out_dims * 4
                      + weight_bytes + bias_bytes)

    kernel = functools.partial(_mlp_kernel, compute_dtype=compute_dtype)

    def make_call(weight_pipeline_mode):
        def const_spec(arr):
            # Grid-invariant weight/bias blocks stay resident in VMEM across
            # the batch loop; single-buffer them when supported.
            if weight_pipeline_mode is None:
                return pl.BlockSpec(arr.shape, lambda i: (0, 0))
            return pl.BlockSpec(arr.shape, lambda i: (0, 0),
                                pipeline_mode=weight_pipeline_mode)

        in_specs = [x_spec] + [const_spec(params[k]) for k in _PARAM_KEYS]
        return pl.pallas_call(
            kernel,
            out_shape=jax.ShapeDtypeStruct((B_pad, out_dims), jnp.float32),
            grid_spec=pltpu.PrefetchScalarGridSpec(
                num_scalar_prefetch=0,
                grid=grid,
                in_specs=in_specs,
                out_specs=out_spec,
            ),
            compiler_params=pltpu.CompilerParams(
                dimension_semantics=("parallel",),      # megacore / v7x 2-TC split
                vmem_limit_bytes=vmem_limit_bytes),
            cost_estimate=pl.CostEstimate(
                flops=flops, transcendentals=0, bytes_accessed=bytes_accessed),
        )

    try:
        out_padded = make_call(pl.Buffered(1))(*operands)
    except Exception:
        # Fallback: default (double) buffering of the grid-invariant operands if
        # this Pallas version rejects single-buffered pipeline_mode.
        out_padded = make_call(None)(*operands)

    return out_padded[:B] if pad_rows else out_padded


def init_dqn_params(key, input_dims, hid_dim, out_dims):
    """Deterministic init mimicking PyTorch nn.Linear default:
    U(-1/sqrt(fan_in), 1/sqrt(fan_in)) for both weight and bias."""
    dims = [(input_dims, hid_dim),
            (hid_dim, hid_dim),
            (hid_dim, hid_dim),
            (hid_dim, hid_dim),
            (hid_dim, out_dims)]
    params = {}
    for idx, (fan_in, fan_out) in enumerate(dims, start=1):
        key, kw, kb = jax.random.split(key, 3)
        bound = 1.0 / jnp.sqrt(jnp.float32(fan_in))
        # stored as (in, out) = transpose of PyTorch's (out, in)
        params[f"w{idx}"] = jax.random.uniform(
            kw, (fan_in, fan_out), jnp.float32, -bound, bound)
        params[f"b{idx}"] = jax.random.uniform(
            kb, (1, fan_out), jnp.float32, -bound, bound)
    return params


def dqn_forward_ref(state, params):
    """Pure-JAX reference for correctness checking (matches the torch module)."""
    h = state.astype(jnp.float32)
    for i in range(1, 5):
        h = jnp.maximum(h @ params[f"w{i}"] + params[f"b{i}"], 0.0)
    return h @ params["w5"] + params["b5"]


if __name__ == "__main__":
    # Small shapes consistent with the module: state (B, input_dims) -> Q (B, out_dims)
    # TODO(synk): optimizer (Adam) and checkpoint I/O are training/persistence
    # concerns and are intentionally not part of this forward kernel.
    input_dims = 16
    hid_dim = 32
    out_dims = 4

    key = jax.random.PRNGKey(0)
    key, kx1, kx2 = jax.random.split(key, 3)
    params = init_dqn_params(key, input_dims, hid_dim, out_dims)

    # --- case 1: tiny batch, exact f32 compute path ---
    params_f32 = prepare_dqn_params(params, compute_dtype=jnp.float32)
    B1 = 8
    state1 = jax.random.normal(kx1, (B1, input_dims), jnp.float32)
    q1 = jax.block_until_ready(dqn_forward(state1, params_f32))
    q1_ref = dqn_forward_ref(state1, params)
    assert q1.shape == (B1, out_dims)
    assert jnp.allclose(q1, q1_ref, atol=1e-5, rtol=1e-5), "f32 mismatch vs reference"

    # --- case 2: batch not a tile multiple (exercises row padding + multi-step grid),
    #             default bf16 compute path (weights + matmul inputs bf16, f32 accum).
    #             Tolerance is loose because activations are bf16-cast each layer. ---
    params_bf16 = prepare_dqn_params(params, compute_dtype=jnp.bfloat16)
    B2 = 300
    state2 = jax.random.normal(kx2, (B2, input_dims), jnp.float32)
    q2 = jax.block_until_ready(dqn_forward(state2, params_bf16, batch_tile=128))
    q2_ref = dqn_forward_ref(state2, params)
    assert q2.shape == (B2, out_dims)
    assert bool(jnp.all(jnp.isfinite(q2)))
    assert jnp.allclose(q2, q2_ref, atol=1e-1, rtol=1e-1), "bf16 mismatch vs reference"

    print("KERNEL_OK")
</pallas_src>

<mosaic_0001>
module attributes {stable_mosaic.version = 11 : i64} {
  func.func @_mlp_kernel(%arg0: i32, %arg1: memref<8x16xf32, #tpu.memory_space<vmem>>, %arg2: memref<16x128xf32, #tpu.memory_space<vmem>>, %arg3: memref<1x128xf32, #tpu.memory_space<vmem>>, %arg4: memref<128x128xf32, #tpu.memory_space<vmem>>, %arg5: memref<1x128xf32, #tpu.memory_space<vmem>>, %arg6: memref<128x128xf32, #tpu.memory_space<vmem>>, %arg7: memref<1x128xf32, #tpu.memory_space<vmem>>, %arg8: memref<128x128xf32, #tpu.memory_space<vmem>>, %arg9: memref<1x128xf32, #tpu.memory_space<vmem>>, %arg10: memref<128x4xf32, #tpu.memory_space<vmem>>, %arg11: memref<1x4xf32, #tpu.memory_space<vmem>>, %arg12: memref<8x4xf32, #tpu.memory_space<vmem>>) attributes {dimension_semantics = [#tpu.dimension_semantics<parallel>], iteration_bounds = array<i64: 1>, scalar_prefetch = 0 : i64, scratch_operands = 0 : i64, tpu.core_type = #tpu.core_type<tc>, window_params = [{transform_indices = @transform_0, window_bounds = array<i64: 8, 16>}, {pipeline_mode = #tpu.pipeline_mode<synchronous>, transform_indices = @transform_1, window_bounds = array<i64: 16, 128>}, {pipeline_mode = #tpu.pipeline_mode<synchronous>, transform_indices = @transform_2, window_bounds = array<i64: 1, 128>}, {pipeline_mode = #tpu.pipeline_mode<synchronous>, transform_indices = @transform_3, window_bounds = array<i64: 128, 128>}, {pipeline_mode = #tpu.pipeline_mode<synchronous>, transform_indices = @transform_4, window_bounds = array<i64: 1, 128>}, {pipeline_mode = #tpu.pipeline_mode<synchronous>, transform_indices = @transform_5, window_bounds = array<i64: 128, 128>}, {pipeline_mode = #tpu.pipeline_mode<synchronous>, transform_indices = @transform_6, window_bounds = array<i64: 1, 128>}, {pipeline_mode = #tpu.pipeline_mode<synchronous>, transform_indices = @transform_7, window_bounds = array<i64: 128, 128>}, {pipeline_mode = #tpu.pipeline_mode<synchronous>, transform_indices = @transform_8, window_bounds = array<i64: 1, 128>}, {pipeline_mode = #tpu.pipeline_mode<synchronous>, transform_indices = @transform_9, window_bounds = array<i64: 128, 4>}, {pipeline_mode = #tpu.pipeline_mode<synchronous>, transform_indices = @transform_10, window_bounds = array<i64: 1, 4>}, {transform_indices = @transform_11, window_bounds = array<i64: 8, 4>}]} {
    %c0 = arith.constant 0 : index
    %c0_0 = arith.constant 0 : index
    %0 = vector.load %arg1[%c0, %c0_0] : memref<8x16xf32, #tpu.memory_space<vmem>>, vector<8x16xf32>
    %c0_1 = arith.constant 0 : index
    %c0_2 = arith.constant 0 : index
    %1 = vector.load %arg2[%c0_1, %c0_2] : memref<16x128xf32, #tpu.memory_space<vmem>>, vector<16x128xf32>
    %cst = arith.constant dense<0.000000e+00> : vector<8x128xf32>
    %2 = tpu.matmul %0, %1, %cst {dimension_numbers = #tpu.dot_dimension_numbers<[1], [0], [0], [1], [0, 0, 1, 1], [], []>} : vector<8x16xf32>, vector<16x128xf32>, vector<8x128xf32> -> vector<8x128xf32>
    %c0_3 = arith.constant 0 : index
    %c0_4 = arith.constant 0 : index
    %3 = vector.load %arg3[%c0_3, %c0_4] : memref<1x128xf32, #tpu.memory_space<vmem>>, vector<1x128xf32>
    %4 = vector.broadcast %3 : vector<1x128xf32> to vector<8x128xf32>
    %5 = arith.addf %2, %4 : vector<8x128xf32>
    %cst_5 = arith.constant 0.000000e+00 : f32
    %6 = vector.broadcast %cst_5 : f32 to vector<8x128xf32>
    %7 = arith.maximumf %5, %6 : vector<8x128xf32>
    %c0_6 = arith.constant 0 : index
    %c0_7 = arith.constant 0 : index
    %8 = vector.load %arg4[%c0_6, %c0_7] : memref<128x128xf32, #tpu.memory_space<vmem>>, vector<128x128xf32>
    %cst_8 = arith.constant dense<0.000000e+00> : vector<8x128xf32>
    %9 = tpu.matmul %7, %8, %cst_8 {dimension_numbers = #tpu.dot_dimension_numbers<[1], [0], [0], [1], [0, 0, 1, 1], [], []>} : vector<8x128xf32>, vector<128x128xf32>, vector<8x128xf32> -> vector<8x128xf32>
    %c0_9 = arith.constant 0 : index
    %c0_10 = arith.constant 0 : index
    %10 = vector.load %arg5[%c0_9, %c0_10] : memref<1x128xf32, #tpu.memory_space<vmem>>, vector<1x128xf32>
    %11 = vector.broadcast %10 : vector<1x128xf32> to vector<8x128xf32>
    %12 = arith.addf %9, %11 : vector<8x128xf32>
    %cst_11 = arith.constant 0.000000e+00 : f32
    %13 = vector.broadcast %cst_11 : f32 to vector<8x128xf32>
    %14 = arith.maximumf %12, %13 : vector<8x128xf32>
    %c0_12 = arith.constant 0 : index
    %c0_13 = arith.constant 0 : index
    %15 = vector.load %arg6[%c0_12, %c0_13] : memref<128x128xf32, #tpu.memory_space<vmem>>, vector<128x128xf32>
    %cst_14 = arith.constant dense<0.000000e+00> : vector<8x128xf32>
    %16 = tpu.matmul %14, %15, %cst_14 {dimension_numbers = #tpu.dot_dimension_numbers<[1], [0], [0], [1], [0, 0, 1, 1], [], []>} : vector<8x128xf32>, vector<128x128xf32>, vector<8x128xf32> -> vector<8x128xf32>
    %c0_15 = arith.constant 0 : index
    %c0_16 = arith.constant 0 : index
    %17 = vector.load %arg7[%c0_15, %c0_16] : memref<1x128xf32, #tpu.memory_space<vmem>>, vector<1x128xf32>
    %18 = vector.broadcast %17 : vector<1x128xf32> to vector<8x128xf32>
    %19 = arith.addf %16, %18 : vector<8x128xf32>
    %cst_17 = arith.constant 0.000000e+00 : f32
    %20 = vector.broadcast %cst_17 : f32 to vector<8x128xf32>
    %21 = arith.maximumf %19, %20 : vector<8x128xf32>
    %c0_18 = arith.constant 0 : index
    %c0_19 = arith.constant 0 : index
    %22 = vector.load %arg8[%c0_18, %c0_19] : memref<128x128xf32, #tpu.memory_space<vmem>>, vector<128x128xf32>
    %cst_20 = arith.constant dense<0.000000e+00> : vector<8x128xf32>
    %23 = tpu.matmul %21, %22, %cst_20 {dimension_numbers = #tpu.dot_dimension_numbers<[1], [0], [0], [1], [0, 0, 1, 1], [], []>} : vector<8x128xf32>, vector<128x128xf32>, vector<8x128xf32> -> vector<8x128xf32>
    %c0_21 = arith.constant 0 : index
    %c0_22 = arith.constant 0 : index
    %24 = vector.load %arg9[%c0_21, %c0_22] : memref<1x128xf32, #tpu.memory_space<vmem>>, vector<1x128xf32>
    %25 = vector.broadcast %24 : vector<1x128xf32> to vector<8x128xf32>
    %26 = arith.addf %23, %25 : vector<8x128xf32>
    %cst_23 = arith.constant 0.000000e+00 : f32
    %27 = vector.broadcast %cst_23 : f32 to vector<8x128xf32>
    %28 = arith.maximumf %26, %27 : vector<8x128xf32>
    %c0_24 = arith.constant 0 : index
    %c0_25 = arith.constant 0 : index
    %29 = vector.load %arg10[%c0_24, %c0_25] : memref<128x4xf32, #tpu.memory_space<vmem>>, vector<128x4xf32>
    %cst_26 = arith.constant dense<0.000000e+00> : vector<8x4xf32>
    %30 = tpu.matmul %28, %29, %cst_26 {dimension_numbers = #tpu.dot_dimension_numbers<[1], [0], [0], [1], [0, 0, 1, 1], [], []>} : vector<8x128xf32>, vector<128x4xf32>, vector<8x4xf32> -> vector<8x4xf32>
    %c0_27 = arith.constant 0 : index
    %c0_28 = arith.constant 0 : index
    %31 = vector.load %arg11[%c0_27, %c0_28] : memref<1x4xf32, #tpu.memory_space<vmem>>, vector<1x4xf32>
    %32 = vector.broadcast %31 : vector<1x4xf32> to vector<8x4xf32>
    %33 = arith.addf %30, %32 : vector<8x4xf32>
    %c0_29 = arith.constant 0 : index
    %c0_30 = arith.constant 0 : index
    %34 = vector.load %arg12[%c0_29, %c0_30] : memref<8x4xf32, #tpu.memory_space<vmem>>, vector<8x4xf32>
    tpu.vector_store %arg12[%c0_29, %c0_30], %33 {strides = array<i32>} : memref<8x4xf32, #tpu.memory_space<vmem>>, vector<8x4xf32>,
    return
  }
  func.func @transform_0(%arg0: i32) -> (i32, i32) {
    %c0_i32 = arith.constant 0 : i32
    %c0_i32_0 = arith.constant 0 : i32
    return %arg0, %c0_i32 : i32, i32
  }
  func.func @transform_1(%arg0: i32) -> (i32, i32) {
    %c0_i32 = arith.constant 0 : i32
    %c0_i32_0 = arith.constant 0 : i32
    %c0_i32_1 = arith.constant 0 : i32
    return %c0_i32, %c0_i32_0 : i32, i32
  }
  func.func @transform_2(%arg0: i32) -> (i32, i32) {
    %c0_i32 = arith.constant 0 : i32
    %c0_i32_0 = arith.constant 0 : i32
    %c0_i32_1 = arith.constant 0 : i32
    return %c0_i32, %c0_i32_0 : i32, i32
  }
  func.func @transform_3(%arg0: i32) -> (i32, i32) {
    %c0_i32 = arith.constant 0 : i32
    %c0_i32_0 = arith.constant 0 : i32
    %c0_i32_1 = arith.constant 0 : i32
    return %c0_i32, %c0_i32_0 : i32, i32
  }
  func.func @transform_4(%arg0: i32) -> (i32, i32) {
    %c0_i32 = arith.constant 0 : i32
    %c0_i32_0 = arith.constant 0 : i32
    %c0_i32_1 = arith.constant 0 : i32
    return %c0_i32, %c0_i32_0 : i32, i32
  }
  func.func @transform_5(%arg0: i32) -> (i32, i32) {
    %c0_i32 = arith.constant 0 : i32
    %c0_i32_0 = arith.constant 0 : i32
    %c0_i32_1 = arith.constant 0 : i32
    return %c0_i32, %c0_i32_0 : i32, i32
  }
  func.func @transform_6(%arg0: i32) -> (i32, i32) {
    %c0_i32 = arith.constant 0 : i32
    %c0_i32_0 = arith.constant 0 : i32
    %c0_i32_1 = arith.constant 0 : i32
    return %c0_i32, %c0_i32_0 : i32, i32
  }
  func.func @transform_7(%arg0: i32) -> (i32, i32) {
    %c0_i32 = arith.constant 0 : i32
    %c0_i32_0 = arith.constant 0 : i32
    %c0_i32_1 = arith.constant 0 : i32
    return %c0_i32, %c0_i32_0 : i32, i32
  }
  func.func @transform_8(%arg0: i32) -> (i32, i32) {
    %c0_i32 = arith.constant 0 : i32
    %c0_i32_0 = arith.constant 0 : i32
    %c0_i32_1 = arith.constant 0 : i32
    return %c0_i32, %c0_i32_0 : i32, i32
  }
  func.func @transform_9(%arg0: i32) -> (i32, i32) {
    %c0_i32 = arith.constant 0 : i32
    %c0_i32_0 = arith.constant 0 : i32
    %c0_i32_1 = arith.constant 0 : i32
    return %c0_i32, %c0_i32_0 : i32, i32
  }
  func.func @transform_10(%arg0: i32) -> (i32, i32) {
    %c0_i32 = arith.constant 0 : i32
    %c0_i32_0 = arith.constant 0 : i32
    %c0_i32_1 = arith.constant 0 : i32
    return %c0_i32, %c0_i32_0 : i32, i32
  }
  func.func @transform_11(%arg0: i32) -> (i32, i32) {
    %c0_i32 = arith.constant 0 : i32
    %c0_i32_0 = arith.constant 0 : i32
    return %arg0, %c0_i32 : i32, i32
  }
}

module attributes {stable_mosaic.version = 11 : i64} {
  func.func @_mlp_kernel(%arg0: i32, %arg1: memref<8x16xf32, #tpu.memory_space<vmem>>, %arg2: memref<16x128xf32, #tpu.memory_space<vmem>>, %arg3: memref<1x128xf32, #tpu.memory_space<vmem>>, %arg4: memref<128x128xf32, #tpu.memory_space<vmem>>, %arg5: memref<1x128xf32, #tpu.memory_space<vmem>>, %arg6: memref<128x128xf32, #tpu.memory_space<vmem>>, %arg7: memref<1x128xf32, #tpu.memory_space<vmem>>, %arg8: memref<128x128xf32, #tpu.memory_space<vmem>>, %arg9: memref<1x128xf32, #tpu.memory_space<vmem>>, %arg10: memref<128x4xf32, #tpu.memory_space<vmem>>, %arg11: memref<1x4xf32, #tpu.memory_space<vmem>>, %arg12: memref<8x4xf32, #tpu.memory_space<vmem>>) attributes {dimension_semantics = [#tpu.dimension_semantics<parallel>], iteration_bounds = array<i64: 1>, scalar_prefetch = 0 : i64, scratch_operands = 0 : i64, tpu.core_type = #tpu.core_type<tc>, window_params = [{transform_indices = @transform_0, window_bounds = array<i64: 8, 16>}, {pipeline_mode = #tpu.pipeline_mode<synchronous>, transform_indices = @transform_1, window_bounds = array<i64: 16, 128>}, {pipeline_mode = #tpu.pipeline_mode<synchronous>, transform_indices = @transform_2, window_bounds = array<i64: 1, 128>}, {pipeline_mode = #tpu.pipeline_mode<synchronous>, transform_indices = @transform_3, window_bounds = array<i64: 128, 128>}, {pipeline_mode = #tpu.pipeline_mode<synchronous>, transform_indices = @transform_4, window_bounds = array<i64: 1, 128>}, {pipeline_mode = #tpu.pipeline_mode<synchronous>, transform_indices = @transform_5, window_bounds = array<i64: 128, 128>}, {pipeline_mode = #tpu.pipeline_mode<synchronous>, transform_indices = @transform_6, window_bounds = array<i64: 1, 128>}, {pipeline_mode = #tpu.pipeline_mode<synchronous>, transform_indices = @transform_7, window_bounds = array<i64: 128, 128>}, {pipeline_mode = #tpu.pipeline_mode<synchronous>, transform_indices = @transform_8, window_bounds = array<i64: 1, 128>}, {pipeline_mode = #tpu.pipeline_mode<synchronous>, transform_indices = @transform_9, window_bounds = array<i64: 128, 4>}, {pipeline_mode = #tpu.pipeline_mode<synchronous>, transform_indices = @transform_10, window_bounds = array<i64: 1, 4>}, {transform_indices = @transform_11, window_bounds = array<i64: 8, 4>}]} {
    %c0 = arith.constant 0 : index
    %c0_0 = arith.constant 0 : index
    %0 = vector.load %arg1[%c0, %c0_0] : memref<8x16xf32, #tpu.memory_space<vmem>>, vector<8x16xf32>
    %c0_1 = arith.constant 0 : index
    %c0_2 = arith.constant 0 : index
    %1 = vector.load %arg2[%c0_1, %c0_2] : memref<16x128xf32, #tpu.memory_space<vmem>>, vector<16x128xf32>
    %cst = arith.constant dense<0.000000e+00> : vector<8x128xf32>
    %2 = tpu.matmul %0, %1, %cst {dimension_numbers = #tpu.dot_dimension_numbers<[1], [0], [0], [1], [0, 0, 1, 1], [], []>} : vector<8x16xf32>, vector<16x128xf32>, vector<8x128xf32> -> vector<8x128xf32>
    %c0_3 = arith.constant 0 : index
    %c0_4 = arith.constant 0 : index
    %3 = vector.load %arg3[%c0_3, %c0_4] : memref<1x128xf32, #tpu.memory_space<vmem>>, vector<1x128xf32>
    %4 = vector.broadcast %3 : vector<1x128xf32> to vector<8x128xf32>
    %5 = arith.addf %2, %4 : vector<8x128xf32>
    %cst_5 = arith.constant 0.000000e+00 : f32
    %6 = vector.broadcast %cst_5 : f32 to vector<8x128xf32>
    %7 = arith.maximumf %5, %6 : vector<8x128xf32>
    %c0_6 = arith.constant 0 : index
    %c0_7 = arith.constant 0 : index
    %8 = vector.load %arg4[%c0_6, %c0_7] : memref<128x128xf32, #tpu.memory_space<vmem>>, vector<128x128xf32>
    %cst_8 = arith.constant dense<0.000000e+00> : vector<8x128xf32>
    %9 = tpu.matmul %7, %8, %cst_8 {dimension_numbers = #tpu.dot_dimension_numbers<[1], [0], [0], [1], [0, 0, 1, 1], [], []>} : vector<8x128xf32>, vector<128x128xf32>, vector<8x128xf32> -> vector<8x128xf32>
    %c0_9 = arith.constant 0 : index
    %c0_10 = arith.constant 0 : index
    %10 = vector.load %arg5[%c0_9, %c0_10] : memref<1x128xf32, #tpu.memory_space<vmem>>, vector<1x128xf32>
    %11 = vector.broadcast %10 : vector<1x128xf32> to vector<8x128xf32>
    %12 = arith.addf %9, %11 : vector<8x128xf32>
    %cst_11 = arith.constant 0.000000e+00 : f32
    %13 = vector.broadcast %cst_11 : f32 to vector<8x128xf32>
    %14 = arith.maximumf %12, %13 : vector<8x128xf32>
    %c0_12 = arith.constant 0 : index
    %c0_13 = arith.constant 0 : index
    %15 = vector.load %arg6[%c0_12, %c0_13] : memref<128x128xf32, #tpu.memory_space<vmem>>, vector<128x128xf32>
    %cst_14 = arith.constant dense<0.000000e+00> : vector<8x128xf32>
    %16 = tpu.matmul %14, %15, %cst_14 {dimension_numbers = #tpu.dot_dimension_numbers<[1], [0], [0], [1], [0, 0, 1, 1], [], []>} : vector<8x128xf32>, vector<128x128xf32>, vector<8x128xf32> -> vector<8x128xf32>
    %c0_15 = arith.constant 0 : index
    %c0_16 = arith.constant 0 : index
    %17 = vector.load %arg7[%c0_15, %c0_16] : memref<1x128xf32, #tpu.memory_space<vmem>>, vector<1x128xf32>
    %18 = vector.broadcast %17 : vector<1x128xf32> to vector<8x128xf32>
    %19 = arith.addf %16, %18 : vector<8x128xf32>
    %cst_17 = arith.constant 0.000000e+00 : f32
    %20 = vector.broadcast %cst_17 : f32 to vector<8x128xf32>
    %21 = arith.maximumf %19, %20 : vector<8x128xf32>
    %c0_18 = arith.constant 0 : index
    %c0_19 = arith.constant 0 : index
    %22 = vector.load %arg8[%c0_18, %c0_19] : memref<128x128xf32, #tpu.memory_space<vmem>>, vector<128x128xf32>
    %cst_20 = arith.constant dense<0.000000e+00> : vector<8x128xf32>
    %23 = tpu.matmul %21, %22, %cst_20 {dimension_numbers = #tpu.dot_dimension_numbers<[1], [0], [0], [1], [0, 0, 1, 1], [], []>} : vector<8x128xf32>, vector<128x128xf32>, vector<8x128xf32> -> vector<8x128xf32>
    %c0_21 = arith.constant 0 : index
    %c0_22 = arith.constant 0 : index
    %24 = vector.load %arg9[%c0_21, %c0_22] : memref<1x128xf32, #tpu.memory_space<vmem>>, vector<1x128xf32>
    %25 = vector.broadcast %24 : vector<1x128xf32> to vector<8x128xf32>
    %26 = arith.addf %23, %25 : vector<8x128xf32>
    %cst_23 = arith.constant 0.000000e+00 : f32
    %27 = vector.broadcast %cst_23 : f32 to vector<8x128xf32>
    %28 = arith.maximumf %26, %27 : vector<8x128xf32>
    %c0_24 = arith.constant 0 : index
    %c0_25 = arith.constant 0 : index
    %29 = vector.load %arg10[%c0_24, %c0_25] : memref<128x4xf32, #tpu.memory_space<vmem>>, vector<128x4xf32>
    %cst_26 = arith.constant dense<0.000000e+00> : vector<8x4xf32>
    %30 = tpu.matmul %28, %29, %cst_26 {dimension_numbers = #tpu.dot_dimension_numbers<[1], [0], [0], [1], [0, 0, 1, 1], [], []>} : vector<8x128xf32>, vector<128x4xf32>, vector<8x4xf32> -> vector<8x4xf32>
    %c0_27 = arith.constant 0 : index
    %c0_28 = arith.constant 0 : index
    %31 = vector.load %arg11[%c0_27, %c0_28] : memref<1x4xf32, #tpu.memory_space<vmem>>, vector<1x4xf32>
    %32 = vector.broadcast %31 : vector<1x4xf32> to vector<8x4xf32>
    %33 = arith.addf %30, %32 : vector<8x4xf32>
    %c0_29 = arith.constant 0 : index
    %c0_30 = arith.constant 0 : index
    %34 = vector.load %arg12[%c0_29, %c0_30] : memref<8x4xf32, #tpu.memory_space<vmem>>, vector<8x4xf32>
    tpu.vector_store %arg12[%c0_29, %c0_30], %33 {strides = array<i32>} : memref<8x4xf32, #tpu.memory_space<vmem>>, vector<8x4xf32>,
    return
  }
  func.func @transform_0(%arg0: i32) -> (i32, i32) {
    %c0_i32 = arith.constant 0 : i32
    %c0_i32_0 = arith.constant 0 : i32
    return %arg0, %c0_i32 : i32, i32
  }
  func.func @transform_1(%arg0: i32) -> (i32, i32) {
    %c0_i32 = arith.constant 0 : i32
    %c0_i32_0 = arith.constant 0 : i32
    %c0_i32_1 = arith.constant 0 : i32
    return %c0_i32, %c0_i32_0 : i32, i32
  }
  func.func @transform_2(%arg0: i32) -> (i32, i32) {
    %c0_i32 = arith.constant 0 : i32
    %c0_i32_0 = arith.constant 0 : i32
    %c0_i32_1 = arith.constant 0 : i32
    return %c0_i32, %c0_i32_0 : i32, i32
  }
  func.func @transform_3(%arg0: i32) -> (i32, i32) {
    %c0_i32 = arith.constant 0 : i32
    %c0_i32_0 = arith.constant 0 : i32
    %c0_i32_1 = arith.constant 0 : i32
    return %c0_i32, %c0_i32_0 : i32, i32
  }
  func.func @transform_4(%arg0: i32) -> (i32, i32) {
    %c0_i32 = arith.constant 0 : i32
    %c0_i32_0 = arith.constant 0 : i32
    %c0_i32_1 = arith.constant 0 : i32
    return %c0_i32, %c0_i32_0 : i32, i32
  }
  func.func @transform_5(%arg0: i32) -> (i32, i32) {
    %c0_i32 = arith.constant 0 : i32
    %c0_i32_0 = arith.constant 0 : i32
    %c0_i32_1 = arith.constant 0 : i32
    return %c0_i32, %c0_i32_0 : i32, i32
  }
  func.func @transform_6(%arg0: i32) -> (i32, i32) {
    %c0_i32 = arith.constant 0 : i32
    %c0_i32_0 = arith.constant 0 : i32
    %c0_i32_1 = arith.constant 0 : i32
    return %c0_i32, %c0_i32_0 : i32, i32
  }
  func.func @transform_7(%arg0: i32) -> (i32, i32) {
    %c0_i32 = arith.constant 0 : i32
    %c0_i32_0 = arith.constant 0 : i32
    %c0_i32_1 = arith.constant 0 : i32
    return %c0_i32, %c0_i32_0 : i32, i32
  }
  func.func @transform_8(%arg0: i32) -> (i32, i32) {
    %c0_i32 = arith.constant 0 : i32
    %c0_i32_0 = arith.constant 0 : i32
    %c0_i32_1 = arith.constant 0 : i32
    return %c0_i32, %c0_i32_0 : i32, i32
  }
  func.func @transform_9(%arg0: i32) -> (i32, i32) {
    %c0_i32 = arith.constant 0 : i32
    %c0_i32_0 = arith.constant 0 : i32
    %c0_i32_1 = arith.constant 0 : i32
    return %c0_i32, %c0_i32_0 : i32, i32
  }
  func.func @transform_10(%arg0: i32) -> (i32, i32) {
    %c0_i32 = arith.constant 0 : i32
    %c0_i32_0 = arith.constant 0 : i32
    %c0_i32_1 = arith.constant 0 : i32
    return %c0_i32, %c0_i32_0 : i32, i32
  }
  func.func @transform_11(%arg0: i32) -> (i32, i32) {
    %c0_i32 = arith.constant 0 : i32
    %c0_i32_0 = arith.constant 0 : i32
    return %arg0, %c0_i32 : i32, i32
  }
}

</mosaic_0001>

<bundles_post_ra>
// kernel: tpu_custom_call.1
= control target key start
LH: loop header
LB: loop body
LE: loop exit
PB: predicated region body
PF: predicated region fallthrough
CT: control target
= control target key end

     0   :  { %16 = vsyncpa [#allocation3], 0  ;;  %s1228_s0 = inlined_call_operand.vmem [shape: f32[8,16], index: 0, kind: input, shape index: {}]   ;;  %s1229_s1 = inlined_call_operand.hbm [shape: f32[16,128], index: 1, kind: input, shape index: {}]   ;;  %s1230_s2 = inlined_call_operand.vmem [shape: f32[1,128], index: 2, kind: input, shape index: {}]   ;;  %s1231_s3 = inlined_call_operand.vmem [shape: f32[128,128], index: 3, kind: input, shape index: {}]   ;;  %s1232_s4 = inlined_call_operand.vmem [shape: f32[1,128], index: 4, kind: input, shape index: {}]   ;;  %s1233_s5 = inlined_call_operand.hbm [shape: f32[128,128], index: 5, kind: input, shape index: {}]   ;;  %s1234_s6 = inlined_call_operand.vmem [shape: f32[1,128], index: 6, kind: input, shape index: {}]   ;;  %s1235_s7 = inlined_call_operand.hbm [shape: f32[128,128], index: 7, kind: input, shape index: {}]   ;;  %s1236_s8 = inlined_call_operand.vmem [shape: f32[1,128], index: 8, kind: input, shape index: {}]   ;;  %s1237_s9 = inlined_call_operand.vmem [shape: f32[128,4], index: 9, kind: input, shape index: {}]   ;;  %s1238_s10 = inlined_call_operand.vmem [shape: f32[1,4], index: 10, kind: input, shape index: {}]   ;;  %s1239_s11 = inlined_call_operand.vmem [shape: f32[8,4], index: 11, kind: output, shape index: {}]  }
   0x1   :  { %17 = vsyncpa [#allocation5], 0  ;;  %s948_s17 = smov [#allocation4]   ;;  %s949_s19 = smov [#allocation2]  }
   0x2   :  { %s43_s18 = sshll.u32 %s948_s17, 4  ;;  %s25_s20 = sshll.u32 %s949_s19, 4  ;;  %s44_s18 = int_to_ptr.vmem [resolvable:$true] %s43_s18  ;;  %s1016_s20 = int_to_ptr.vmem [resolvable:$true] %s25_s20 }
   0x3   :  { %s878_s23 = scalar_lea.hbm %s1233_s5, 2048 }
   0x4   :  { %p879_p0 = scmp.ne.s32.totalorder %s1233_s5, %s878_s23  ;;  %p882_p1 = scmp.lt.u32.totalorder %s878_s23, %s1233_s5 }
   0x6   :  { %p884_p2 = pnand %p882_p1, %p879_p0 }
   0x8   :  { %887 = shalt.err (!%p884_p2)
}
   0x9   :  { %s888_s28 = scalar_lea.vmem %s44_s18, 2048  ;;  %p893_p4 = scmp.lt.s32.totalorder %s44_s18, %s44_s18 }
   0xa   :  { %p889_p3 = scmp.ne.s32.totalorder %s44_s18, %s888_s28  ;;  %p894_p5 = scmp.lt.s32.totalorder %s888_s28, %s888_s28 }
   0xc   :  { %p895_p6 = por %p894_p5, %p893_p4 }
   0xe   :  { %p896_p7 = pnand %p895_p6, %p889_p3 }
  0x10   :  { %899 = shalt.err (!%p896_p7)
}
  0x11   :  { %s950_s29 = smov 128   ;;  %s951_s30 = smov 8  }
  0x12   :  { %49 = dma.hbm_to_vmem [thread:$0]  %s1233_s5, 2048, %s44_s18, [#allocation5], %s950_s29, %s950_s29, %s951_s30  }
  0x13   :  { %s900_s16 = scalar_lea.hbm %s1229_s1, 256 }
  0x14   :  { %p901_p8 = scmp.ne.s32.totalorder %s1229_s1, %s900_s16  ;;  %p904_p9 = scmp.lt.u32.totalorder %s900_s16, %s1229_s1 }
  0x16   :  { %p906_p10 = pnand %p904_p9, %p901_p8 }
  0x18   :  { %909 = shalt.err (!%p906_p10)
}
  0x19   :  { %s910_s23 = scalar_lea.vmem %s1016_s20, 256  ;;  %p915_p12 = scmp.lt.s32.totalorder %s1016_s20, %s1016_s20 }
  0x1a   :  { %p911_p11 = scmp.ne.s32.totalorder %s1016_s20, %s910_s23  ;;  %p916_p13 = scmp.lt.s32.totalorder %s910_s23, %s910_s23 }
  0x1c   :  { %p917_p0 = por %p916_p13, %p915_p12 }
  0x1e   :  { %p918_p1 = pnand %p917_p0, %p911_p11 }
  0x20   :  { %921 = shalt.err (!%p918_p1)
}
  0x21   :  { %31 = dma.hbm_to_vmem [thread:$0]  %s1229_s1, 256, %s1016_s20, [#allocation3], %s950_s29, %s950_s29, %s951_s30  }
  0x22   :  { %s952_s24 = smov [#allocation6]   ;;  %s922_s28 = scalar_lea.hbm %s1235_s7, 2048 }
  0x23   :  { %s57_s25 = sshll.u32 %s952_s24, 4  ;;  %p923_p2 = scmp.ne.s32.totalorder %s1235_s7, %s922_s28  ;;  %s58_s25 = int_to_ptr.vmem [resolvable:$true] %s57_s25 }
  0x24   :  { %p926_p3 = scmp.lt.u32.totalorder %s922_s28, %s1235_s7 }
  0x26   :  { %p928_p4 = pnand %p926_p3, %p923_p2 }
  0x28   :  { %931 = shalt.err (!%p928_p4)
}
  0x29   :  { %s932_s16 = scalar_lea.vmem %s58_s25, 2048  ;;  %p937_p6 = scmp.lt.s32.totalorder %s58_s25, %s58_s25 }
  0x2a   :  { %p933_p5 = scmp.ne.s32.totalorder %s58_s25, %s932_s16  ;;  %p938_p7 = scmp.lt.s32.totalorder %s932_s16, %s932_s16 }
  0x2c   :  { %p939_p8 = por %p938_p7, %p937_p6 }
  0x2e   :  { %p940_p9 = pnand %p939_p8, %p933_p5 }
  0x30   :  { %943 = shalt.err (!%p940_p9)
}
  0x31   :  { %63 = dma.hbm_to_vmem [thread:$0]  %s1235_s7, 2048, %s58_s25, [#allocation5], %s950_s29, %s950_s29, %s951_s30  }
  0x32   :  { %944 = dma.done.wait [#allocation3], 256  }
  0x33   :  { %945 = vsyncadd [#allocation3], 4294967040 }
  0x34   :  { %946 = dma.done.wait [#allocation5], 4096  }
  0x35   :  { %947 = vsyncadd [#allocation5], 4294963200  ;;  %v953_v0 = vmov 0.0|0.0   ;;  %vm954_vm0 = vmmov 0   ;;  %v955_v1 = vmov 0.0   ;;  %v80_v2 = vld [vmem:[#allocation2] sm:$0xff] }
  0x36   :  { %771 = vmatprep.subr.bf16.mxu0 %v953_v0  ;;  %628 = vmatprep.mubr.msk.f32.mxu0 %vm954_vm0, %v955_v1  ;;  %v81_v3 = vld [vmem:[#allocation2 + $0x8] sm:$0xff]  ;;  %v164_v5 = vld [vmem:[%s1231_s3] sm:$0xff]  ;;  %v166_v7 = vld [vmem:[%s1231_s3 + $0x10] sm:$0xff]  ;;  %vm89_vm1 = vcmask 130048   ;;  %vm539_vm2 = vcmask 31744  }
  0x37   :  { %774 = vmatprep.subr.bf16.mxu1 %v953_v0  ;;  %663 = vmatprep.mubr.msk.f32.mxu1 %vm954_vm0, %v955_v1  ;;  %v772_v4 = vpack.c.bf16 %v81_v3, %v80_v2  ;;  %v165_v6 = vld [vmem:[%s1231_s3 + $0x8] sm:$0xff]  ;;  %v167_v9 = vld [vmem:[%s1231_s3 + $0x18] sm:$0xff]  ;;  %v79_v10 = vld [vmem:[%s1228_s0] sm:$0xff] }
  0x38   :  { %v775_v8 = vpack.c.bf16 %v165_v6, %v164_v5  ;;  %v778_v11 = vpack.c.bf16 %v167_v9, %v166_v7  ;;  %v168_v12 = vld [vmem:[%s1231_s3 + $0x20] sm:$0xff]  ;;  %v169_v13 = vld [vmem:[%s1231_s3 + $0x28] sm:$0xff]  ;;  %v170_v15 = vld [vmem:[%s1231_s3 + $0x30] sm:$0xff] }
  0x39   :  { %773 = vmatpush3.bf16.msra.mxu0 %v772_v4  ;;  %v781_v14 = vpack.c.bf16 %v169_v13, %v168_v12  ;;  %v171_v16 = vld [vmem:[%s1231_s3 + $0x38] sm:$0xff]  ;;  %v172_v18 = vld [vmem:[%s1231_s3 + $0x40] sm:$0xff]  ;;  %v173_v19 = vld [vmem:[%s1231_s3 + $0x48] sm:$0xff] }
  0x3a   :  { %776 = vmatpush3.bf16.msra.mxu1 %v775_v8  ;;  %798 = vmatprep.subr.bf16.mxu0 %v953_v0  ;;  %v784_v17 = vpack.c.bf16 %v171_v16, %v170_v15  ;;  %v787_v20 = vpack.c.bf16 %v173_v19, %v172_v18  ;;  %v174_v21 = vld [vmem:[%s1231_s3 + $0x50] sm:$0xff]  ;;  %v175_v22 = vld [vmem:[%s1231_s3 + $0x58] sm:$0xff]  ;;  %v176_v24 = vld [vmem:[%s1231_s3 + $0x60] sm:$0xff] }
  0x3b   :  { %777 = vmatprep.subr.bf16.mxu1 %v953_v0  ;;  %v790_v23 = vpack.c.bf16 %v175_v22, %v174_v21  ;;  %v177_v25 = vld [vmem:[%s1231_s3 + $0x68] sm:$0xff]  ;;  %v178_v27 = vld [vmem:[%s1231_s3 + $0x70] sm:$0xff]  ;;  %v179_v28 = vld [vmem:[%s1231_s3 + $0x78] sm:$0xff] }
  0x3c   :  { %629 = vmatmul.mubr.msk.f32.vlgmr.msra.gmra.mrb[0].mxu0 %vm89_vm1, %v79_v10  ;;  %v793_v26 = vpack.c.bf16 %v177_v25, %v176_v24  ;;  %v796_v29 = vpack.c.bf16 %v179_v28, %v178_v27  ;;  %v258_v30 = vld [vmem:[#allocation4] sm:$0xff]  ;;  %v259_v31 = vld [vmem:[#allocation4 + $0x8] sm:$0xff]  ;;  %v260_v32 = vld [vmem:[#allocation4 + $0x10] sm:$0xff] }
  0x3d   :  { %698 = vmatprep.mubr.msk.f32.mxu0 %vm954_vm0, %v955_v1  ;;  %v799_v33 = vpack.c.bf16 %v259_v31, %v258_v30  ;;  %v261_v34 = vld [vmem:[#allocation4 + $0x18] sm:$0xff]  ;;  %v262_v36 = vld [vmem:[#allocation4 + $0x20] sm:$0xff]  ;;  %v263_v37 = vld [vmem:[#allocation4 + $0x28] sm:$0xff] }
  0x3e   :  { %779 = vmatpush3.bf16.msra.mxu1 %v778_v11  ;;  %v802_v35 = vpack.c.bf16 %v261_v34, %v260_v32  ;;  %v805_v38 = vpack.c.bf16 %v263_v37, %v262_v36  ;;  %v264_v39 = vld [vmem:[#allocation4 + $0x30] sm:$0xff]  ;;  %v265_v40 = vld [vmem:[#allocation4 + $0x38] sm:$0xff]  ;;  %v266_v42 = vld [vmem:[#allocation4 + $0x40] sm:$0xff] }
  0x3f   :  { %780 = vmatprep.subr.bf16.mxu1 %v953_v0  ;;  %800 = vmatpush3.bf16.msra.mxu0 %v799_v33  ;;  %v808_v41 = vpack.c.bf16 %v265_v40, %v264_v39  ;;  %v267_v43 = vld [vmem:[#allocation4 + $0x48] sm:$0xff]  ;;  %v268_v45 = vld [vmem:[#allocation4 + $0x50] sm:$0xff]  ;;  %v269_v46 = vld [vmem:[#allocation4 + $0x58] sm:$0xff] }
  0x40   :  { %801 = vmatprep.subr.bf16.mxu0 %v953_v0  ;;  %v811_v44 = vpack.c.bf16 %v267_v43, %v266_v42  ;;  %v814_v47 = vpack.c.bf16 %v269_v46, %v268_v45  ;;  %v270_v48 = vld [vmem:[#allocation4 + $0x60] sm:$0xff]  ;;  %v271_v49 = vld [vmem:[#allocation4 + $0x68] sm:$0xff]  ;;  %v547_v51 = vld [vmem:[%s1230_s2] ss:$0 sm:$0xff] }
  0x41   :  { %v817_v50 = vpack.c.bf16 %v271_v49, %v270_v48  ;;  %v272_v56 = vld [vmem:[#allocation4 + $0x70] sm:$0xff]  ;;  %v273_v57 = vld [vmem:[#allocation4 + $0x78] sm:$0xff]  ;;  %v352_v59 = vld [vmem:[#allocation6] sm:$0xff] }
  0x42   :  { %782 = vmatpush3.bf16.msra.mxu1 %v781_v14  ;;  %v820_v58 = vpack.c.bf16 %v273_v57, %v272_v56  ;;  %v353_v60 = vld [vmem:[#allocation6 + $0x8] sm:$0xff]  ;;  %v354_v61 = vld [vmem:[#allocation6 + $0x10] sm:$0xff]  ;;  %v355_v63 = vld [vmem:[#allocation6 + $0x18] sm:$0xff] }
  0x43   :  { %783 = vmatprep.subr.bf16.mxu1 %v953_v0  ;;  %803 = vmatpush3.bf16.msra.mxu0 %v802_v35  ;;  %v823_v62 = vpack.c.bf16 %v353_v60, %v352_v59  ;;  %v826_v2 = vpack.c.bf16 %v355_v63, %v354_v61  ;;  %v356_v3 = vld [vmem:[#allocation6 + $0x20] sm:$0xff]  ;;  %v357_v4 = vld [vmem:[#allocation6 + $0x28] sm:$0xff]  ;;  %v358_v6 = vld [vmem:[#allocation6 + $0x30] sm:$0xff] }
  0x44   :  { %804 = vmatprep.subr.bf16.mxu0 %v953_v0  ;;  %v829_v5 = vpack.c.bf16 %v357_v4, %v356_v3  ;;  %v359_v7 = vld [vmem:[#allocation6 + $0x38] sm:$0xff]  ;;  %v360_v9 = vld [vmem:[#allocation6 + $0x40] sm:$0xff]  ;;  %v361_v10 = vld [vmem:[#allocation6 + $0x48] sm:$0xff] }
  0x45   :  { %v832_v8 = vpack.c.bf16 %v359_v7, %v358_v6  ;;  %v835_v11 = vpack.c.bf16 %v361_v10, %v360_v9  ;;  %v362_v12 = vld [vmem:[#allocation6 + $0x50] sm:$0xff]  ;;  %v363_v13 = vld [vmem:[#allocation6 + $0x58] sm:$0xff]  ;;  %v364_v15 = vld [vmem:[#allocation6 + $0x60] sm:$0xff] }
  0x46   :  { %785 = vmatpush3.bf16.msra.mxu1 %v784_v17  ;;  %v838_v14 = vpack.c.bf16 %v363_v13, %v362_v12  ;;  %v365_v16 = vld [vmem:[#allocation6 + $0x68] sm:$0xff]  ;;  %v549_v18 = vld [vmem:[%s1232_s4] ss:$0 sm:$0xff]  ;;  %v367_v24 = vld [vmem:[#allocation6 + $0x78] sm:$0xff] }
  0x47   :  { %786 = vmatprep.subr.bf16.mxu1 %v953_v0  ;;  %806 = vmatpush3.bf16.msra.mxu0 %v805_v38  ;;  %v841_v17 = vpack.c.bf16 %v365_v16, %v364_v15  ;;  %v447_v27 = vld [vmem:[%s1237_s9 + $0x8] sm:$0xff]  ;;  %v448_v28 = vld [vmem:[%s1237_s9 + $0x10] sm:$0xff]  ;;  %v450_v31 = vld [vmem:[%s1237_s9 + $0x20] sm:$0xff] }
  0x48   :  { %807 = vmatprep.subr.bf16.mxu0 %v953_v0  ;;  %v451_v32 = vld [vmem:[%s1237_s9 + $0x28] sm:$0xff]  ;;  %v452_v34 = vld [vmem:[%s1237_s9 + $0x30] sm:$0xff]  ;;  %v453_v35 = vld [vmem:[%s1237_s9 + $0x38] sm:$0xff] }
  0x49   :  { %v853_v33 = vpack.c.bf16 %v451_v32, %v450_v31  ;;  %v856_v36 = vpack.c.bf16 %v453_v35, %v452_v34  ;;  %v454_v37 = vld [vmem:[%s1237_s9 + $0x40] sm:$0xff]  ;;  %v455_v38 = vld [vmem:[%s1237_s9 + $0x48] sm:$0xff]  ;;  %v456_v40 = vld [vmem:[%s1237_s9 + $0x50] sm:$0xff] }
  0x4a   :  { %788 = vmatpush3.bf16.msra.mxu1 %v787_v20  ;;  %v859_v39 = vpack.c.bf16 %v455_v38, %v454_v37  ;;  %v458_v43 = vld [vmem:[%s1237_s9 + $0x60] sm:$0xff] }
  0x4b   :  { %789 = vmatprep.subr.bf16.mxu1 %v953_v0  ;;  %809 = vmatpush3.bf16.msra.mxu0 %v808_v41  ;;  %v457_v41 = vld [vmem:[%s1237_s9 + $0x58] sm:$0xff]  ;;  %v550_v46 = vld [vmem:[%s1234_s6] ss:$0 sm:$0xff] }
  0x4c   :  { %810 = vmatprep.subr.bf16.mxu0 %v953_v0  ;;  %v862_v42 = vpack.c.bf16 %v457_v41, %v456_v40 }
  0x4e   :  { %791 = vmatpush3.bf16.msra.mxu1 %v790_v23  ;;  %v366_v23 = vld [vmem:[#allocation6 + $0x70] sm:$0xff] }
  0x4f   :  { %792 = vmatprep.subr.bf16.mxu1 %v953_v0  ;;  %812 = vmatpush3.bf16.msra.mxu0 %v811_v44  ;;  %v844_v25 = vpack.c.bf16 %v367_v24, %v366_v23  ;;  %v459_v44 = vld [vmem:[%s1237_s9 + $0x68] sm:$0xff] }
  0x50   :  { %813 = vmatprep.subr.bf16.mxu0 %v953_v0  ;;  %v865_v45 = vpack.c.bf16 %v459_v44, %v458_v43 }
  0x52   :  { %794 = vmatpush3.bf16.msra.mxu1 %v793_v26  ;;  %v446_v26 = vld [vmem:[%s1237_s9] sm:$0xff] }
  0x53   :  { %795 = vmatprep.subr.bf16.mxu1 %v953_v0  ;;  %815 = vmatpush3.bf16.msra.mxu0 %v814_v47 }
  0x54   :  { %816 = vmatprep.subr.bf16.mxu0 %v953_v0 }
  0x56   :  { %797 = vmatpush3.bf16.msra.mxu1 %v796_v29  ;;  %v847_v29 = vpack.c.bf16 %v447_v27, %v446_v26 }
  0x57   :  { %822 = vmatprep.subr.bf16.mxu1 %v953_v0  ;;  %818 = vmatpush3.bf16.msra.mxu0 %v817_v50 }
  0x58   :  { %819 = vmatprep.subr.bf16.mxu0 %v953_v0 }
  0x5b   :  { %821 = vmatpush3.bf16.msra.mxu0 %v820_v58  ;;  %v552_v58 = vld [vmem:[%s1238_s10] ss:$0 sm:$0xff] }
  0x5c   :  { %846 = vmatprep.subr.bf16.mxu0 %v953_v0 }
 0x10f   :  { %v159_v52 = vpop.f32.mrb[0].mxu0 }
 0x110   :  { %v160_v53 = vadd.f32 %v547_v51, %v159_v52  ;;  %v630_v54 = vpop.f32.mrb[1].mxu0  ;;  %v460_v51 = vld [vmem:[%s1237_s9 + $0x70] sm:$0xff]  ;;  %v461_v52 = vld [vmem:[%s1237_s9 + $0x78] sm:$0xff] }
 0x112   :  { %v163_v55 = vmax.f32 %v160_v53, 0.0  ;;  %v868_v53 = vpack.c.bf16 %v461_v52, %v460_v51 }
 0x114   :  { %664 = vmatmul.mubr.f32.vlgmr.msra.gmra.mrb[0].mxu1 %v163_v55 }
 0x115   :  { %733 = vmatprep.mubr.msk.f32.mxu1 %vm954_vm0, %v955_v1  ;;  %824 = vmatpush3.bf16.msra.mxu1 %v823_v62 }
 0x116   :  { %825 = vmatprep.subr.bf16.mxu1 %v953_v0 }
 0x119   :  { %827 = vmatpush3.bf16.msra.mxu1 %v826_v2 }
 0x11a   :  { %828 = vmatprep.subr.bf16.mxu1 %v953_v0 }
 0x11d   :  { %830 = vmatpush3.bf16.msra.mxu1 %v829_v5 }
 0x11e   :  { %831 = vmatprep.subr.bf16.mxu1 %v953_v0 }
 0x121   :  { %833 = vmatpush3.bf16.msra.mxu1 %v832_v8 }
 0x122   :  { %834 = vmatprep.subr.bf16.mxu1 %v953_v0 }
 0x125   :  { %836 = vmatpush3.bf16.msra.mxu1 %v835_v11 }
 0x126   :  { %837 = vmatprep.subr.bf16.mxu1 %v953_v0 }
 0x129   :  { %839 = vmatpush3.bf16.msra.mxu1 %v838_v14 }
 0x12a   :  { %840 = vmatprep.subr.bf16.mxu1 %v953_v0 }
 0x12d   :  { %842 = vmatpush3.bf16.msra.mxu1 %v841_v17 }
 0x12e   :  { %843 = vmatprep.subr.bf16.mxu1 %v953_v0 }
 0x131   :  { %845 = vmatpush3.bf16.msra.mxu1 %v844_v25 }
 0x1e7   :  { %v253_v19 = vpop.f32.mrb[0].mxu1 }
 0x1e8   :  { %v254_v20 = vadd.f32 %v549_v18, %v253_v19  ;;  %v665_v21 = vpop.f32.mrb[1].mxu1 }
 0x1ea   :  { %v257_v22 = vmax.f32 %v254_v20, 0.0 }
 0x1ec   :  { %699 = vmatmul.mubr.f32.vlgmr.msra.gmra.mrb[2].mxu0 %v257_v22 }
 0x1ed   :  { %768 = vmatprep.mubr.msk.f32.mxu0 %vm954_vm0, %v955_v1  ;;  %v449_v1 = vld [vmem:[%s1237_s9 + $0x18] sm:$0xff]  ;;  %848 = vmatpush3.bf16.msra.mxu0 %v847_v29 }
 0x1ee   :  { %v850_v30 = vpack.c.bf16 %v449_v1, %v448_v28  ;;  %849 = vmatprep.subr.bf16.mxu0 %v953_v0 }
 0x1f1   :  { %851 = vmatpush3.bf16.msra.mxu0 %v850_v30 }
 0x1f2   :  { %852 = vmatprep.subr.bf16.mxu0 %v953_v0 }
 0x1f5   :  { %854 = vmatpush3.bf16.msra.mxu0 %v853_v33 }
 0x1f6   :  { %855 = vmatprep.subr.bf16.mxu0 %v953_v0 }
 0x1f9   :  { %857 = vmatpush3.bf16.msra.mxu0 %v856_v36 }
 0x1fa   :  { %858 = vmatprep.subr.bf16.mxu0 %v953_v0 }
 0x1fd   :  { %860 = vmatpush3.bf16.msra.mxu0 %v859_v39 }
 0x1fe   :  { %861 = vmatprep.subr.bf16.mxu0 %v953_v0 }
 0x201   :  { %863 = vmatpush3.bf16.msra.mxu0 %v862_v42 }
 0x202   :  { %864 = vmatprep.subr.bf16.mxu0 %v953_v0 }
 0x205   :  { %866 = vmatpush3.bf16.msra.mxu0 %v865_v45 }
 0x206   :  { %867 = vmatprep.subr.bf16.mxu0 %v953_v0  ;;  %v551_v0 = vld [vmem:[%s1236_s8] ss:$0 sm:$0xff] }
 0x209   :  { %869 = vmatpush3.bf16.msra.mxu0 %v868_v53 }
 0x2bf   :  { %v347_v47 = vpop.f32.mrb[2].mxu0 }
 0x2c0   :  { %v348_v48 = vadd.f32 %v550_v46, %v347_v47  ;;  %v700_v49 = vpop.f32.mrb[3].mxu0 }
 0x2c2   :  { %v351_v50 = vmax.f32 %v348_v48, 0.0 }
 0x2c4   :  { %734 = vmatmul.mubr.f32.vlgmr.msra.gmra.mrb[2].mxu1 %v351_v50 }
 0x397   :  { %v441_v54 = vpop.f32.mrb[2].mxu1 }
 0x398   :  { %v442_v55 = vadd.f32 %v551_v0, %v441_v54  ;;  %v735_v56 = vpop.f32.mrb[3].mxu1 }
 0x39a   :  { %v445_v57 = vmax.f32 %v442_v55, 0.0 }
 0x39c   :  { %769 = vmatmul.mubr.f32.vlgmr.msra.gmra.mrb[4].mxu0 %v445_v57 }
 0x46f   :  { %v535_v59 = vpop.f32.mrb[4].mxu0 }
 0x470   :  { %v536_v60 = vadd.f32 %v552_v58, %v535_v59  ;;  %v770_v61 = vpop.f32.mrb[5].mxu0 }
 0x472   :  { %540 = vst.msk [vmem:[%s1239_s11] sm:$0xff] %vm539_vm2, %v536_v60 }
 0x473   :  { %545 = vsyncpa [#allocation3], 1 }
 0x474   :  { %546 = vsyncpa [#allocation5], 1 }

// kernel: tpu_custom_call.1
= control target key start
LH: loop header
LB: loop body
LE: loop exit
PB: predicated region body
PF: predicated region fallthrough
CT: control target
= control target key end

     0   :  { %16 = vsyncpa [#allocation3], 0  ;;  %s1228_s0 = inlined_call_operand.vmem [shape: f32[8,16], index: 0, kind: input, shape index: {}]   ;;  %s1229_s1 = inlined_call_operand.hbm [shape: f32[16,128], index: 1, kind: input, shape index: {}]   ;;  %s1230_s2 = inlined_call_operand.vmem [shape: f32[1,128], index: 2, kind: input, shape index: {}]   ;;  %s1231_s3 = inlined_call_operand.vmem [shape: f32[128,128], index: 3, kind: input, shape index: {}]   ;;  %s1232_s4 = inlined_call_operand.vmem [shape: f32[1,128], index: 4, kind: input, shape index: {}]   ;;  %s1233_s5 = inlined_call_operand.hbm [shape: f32[128,128], index: 5, kind: input, shape index: {}]   ;;  %s1234_s6 = inlined_call_operand.vmem [shape: f32[1,128], index: 6, kind: input, shape index: {}]   ;;  %s1235_s7 = inlined_call_operand.hbm [shape: f32[128,128], index: 7, kind: input, shape index: {}]   ;;  %s1236_s8 = inlined_call_operand.vmem [shape: f32[1,128], index: 8, kind: input, shape index: {}]   ;;  %s1237_s9 = inlined_call_operand.vmem [shape: f32[128,4], index: 9, kind: input, shape index: {}]   ;;  %s1238_s10 = inlined_call_operand.vmem [shape: f32[1,4], index: 10, kind: input, shape index: {}]   ;;  %s1239_s11 = inlined_call_operand.vmem [shape: f32[8,4], index: 11, kind: output, shape index: {}]  }
   0x1   :  { %17 = vsyncpa [#allocation5], 0  ;;  %s948_s17 = smov [#allocation4]   ;;  %s949_s19 = smov [#allocation2]  }
   0x2   :  { %s43_s18 = sshll.u32 %s948_s17, 4  ;;  %s25_s20 = sshll.u32 %s949_s19, 4  ;;  %s44_s18 = int_to_ptr.vmem [resolvable:$true] %s43_s18  ;;  %s1016_s20 = int_to_ptr.vmem [resolvable:$true] %s25_s20 }
   0x3   :  { %s878_s23 = scalar_lea.hbm %s1233_s5, 2048 }
   0x4   :  { %p879_p0 = scmp.ne.s32.totalorder %s1233_s5, %s878_s23  ;;  %p882_p1 = scmp.lt.u32.totalorder %s878_s23, %s1233_s5 }
   0x6   :  { %p884_p2 = pnand %p882_p1, %p879_p0 }
   0x8   :  { %887 = shalt.err (!%p884_p2)
}
   0x9   :  { %s888_s28 = scalar_lea.vmem %s44_s18, 2048  ;;  %p893_p4 = scmp.lt.s32.totalorder %s44_s18, %s44_s18 }
   0xa   :  { %p889_p3 = scmp.ne.s32.totalorder %s44_s18, %s888_s28  ;;  %p894_p5 = scmp.lt.s32.totalorder %s888_s28, %s888_s28 }
   0xc   :  { %p895_p6 = por %p894_p5, %p893_p4 }
   0xe   :  { %p896_p7 = pnand %p895_p6, %p889_p3 }
  0x10   :  { %899 = shalt.err (!%p896_p7)
}
  0x11   :  { %s950_s29 = smov 128   ;;  %s951_s30 = smov 8  }
  0x12   :  { %49 = dma.hbm_to_vmem [thread:$0]  %s1233_s5, 2048, %s44_s18, [#allocation5], %s950_s29, %s950_s29, %s951_s30  }
  0x13   :  { %s900_s16 = scalar_lea.hbm %s1229_s1, 256 }
  0x14   :  { %p901_p8 = scmp.ne.s32.totalorder %s1229_s1, %s900_s16  ;;  %p904_p9 = scmp.lt.u32.totalorder %s900_s16, %s1229_s1 }
  0x16   :  { %p906_p10 = pnand %p904_p9, %p901_p8 }
  0x18   :  { %909 = shalt.err (!%p906_p10)
}
  0x19   :  { %s910_s23 = scalar_lea.vmem %s1016_s20, 256  ;;  %p915_p12 = scmp.lt.s32.totalorder %s1016_s20, %s1016_s20 }
  0x1a   :  { %p911_p11 = scmp.ne.s32.totalorder %s1016_s20, %s910_s23  ;;  %p916_p13 = scmp.lt.s32.totalorder %s910_s23, %s910_s23 }
  0x1c   :  { %p917_p0 = por %p916_p13, %p915_p12 }
  0x1e   :  { %p918_p1 = pnand %p917_p0, %p911_p11 }
  0x20   :  { %921 = shalt.err (!%p918_p1)
}
  0x21   :  { %31 = dma.hbm_to_vmem [thread:$0]  %s1229_s1, 256, %s1016_s20, [#allocation3], %s950_s29, %s950_s29, %s951_s30  }
  0x22   :  { %s952_s24 = smov [#allocation6]   ;;  %s922_s28 = scalar_lea.hbm %s1235_s7, 2048 }
  0x23   :  { %s57_s25 = sshll.u32 %s952_s24, 4  ;;  %p923_p2 = scmp.ne.s32.totalorder %s1235_s7, %s922_s28  ;;  %s58_s25 = int_to_ptr.vmem [resolvable:$true] %s57_s25 }
  0x24   :  { %p926_p3 = scmp.lt.u32.totalorder %s922_s28, %s1235_s7 }
  0x26   :  { %p928_p4 = pnand %p926_p3, %p923_p2 }
  0x28   :  { %931 = shalt.err (!%p928_p4)
}
  0x29   :  { %s932_s16 = scalar_lea.vmem %s58_s25, 2048  ;;  %p937_p6 = scmp.lt.s32.totalorder %s58_s25, %s58_s25 }
  0x2a   :  { %p933_p5 = scmp.ne.s32.totalorder %s58_s25, %s932_s16  ;;  %p938_p7 = scmp.lt.s32.totalorder %s932_s16, %s932_s16 }
  0x2c   :  { %p939_p8 = por %p938_p7, %p937_p6 }
  0x2e   :  { %p940_p9 = pnand %p939_p8, %p933_p5 }
  0x30   :  { %943 = shalt.err (!%p940_p9)
}
  0x31   :  { %63 = dma.hbm_to_vmem [thread:$0]  %s1235_s7, 2048, %s58_s25, [#allocation5], %s950_s29, %s950_s29, %s951_s30  }
  0x32   :  { %944 = dma.done.wait [#allocation3], 256  }
  0x33   :  { %945 = vsyncadd [#allocation3], 4294967040 }
  0x34   :  { %946 = dma.done.wait [#allocation5], 4096  }
  0x35   :  { %947 = vsyncadd [#allocation5], 4294963200  ;;  %v953_v0 = vmov 0.0|0.0   ;;  %vm954_vm0 = vmmov 0   ;;  %v955_v1 = vmov 0.0   ;;  %v80_v2 = vld [vmem:[#allocation2] sm:$0xff] }
  0x36   :  { %771 = vmatprep.subr.bf16.mxu0 %v953_v0  ;;  %628 = vmatprep.mubr.msk.f32.mxu0 %vm954_vm0, %v955_v1  ;;  %v81_v3 = vld [vmem:[#allocation2 + $0x8] sm:$0xff]  ;;  %v164_v5 = vld [vmem:[%s1231_s3] sm:$0xff]  ;;  %v166_v7 = vld [vmem:[%s1231_s3 + $0x10] sm:$0xff]  ;;  %vm89_vm1 = vcmask 130048   ;;  %vm539_vm2 = vcmask 31744  }
  0x37   :  { %774 = vmatprep.subr.bf16.mxu1 %v953_v0  ;;  %663 = vmatprep.mubr.msk.f32.mxu1 %vm954_vm0, %v955_v1  ;;  %v772_v4 = vpack.c.bf16 %v81_v3, %v80_v2  ;;  %v165_v6 = vld [vmem:[%s1231_s3 + $0x8] sm:$0xff]  ;;  %v167_v9 = vld [vmem:[%s1231_s3 + $0x18] sm:$0xff]  ;;  %v79_v10 = vld [vmem:[%s1228_s0] sm:$0xff] }
  0x38   :  { %v775_v8 = vpack.c.bf16 %v165_v6, %v164_v5  ;;  %v778_v11 = vpack.c.bf16 %v167_v9, %v166_v7  ;;  %v168_v12 = vld [vmem:[%s1231_s3 + $0x20] sm:$0xff]  ;;  %v169_v13 = vld [vmem:[%s1231_s3 + $0x28] sm:$0xff]  ;;  %v170_v15 = vld [vmem:[%s1231_s3 + $0x30] sm:$0xff] }
  0x39   :  { %773 = vmatpush3.bf16.msra.mxu0 %v772_v4  ;;  %v781_v14 = vpack.c.bf16 %v169_v13, %v168_v12  ;;  %v171_v16 = vld [vmem:[%s1231_s3 + $0x38] sm:$0xff]  ;;  %v172_v18 = vld [vmem:[%s1231_s3 + $0x40] sm:$0xff]  ;;  %v173_v19 = vld [vmem:[%s1231_s3 + $0x48] sm:$0xff] }
  0x3a   :  { %776 = vmatpush3.bf16.msra.mxu1 %v775_v8  ;;  %798 = vmatprep.subr.bf16.mxu0 %v953_v0  ;;  %v784_v17 = vpack.c.bf16 %v171_v16, %v170_v15  ;;  %v787_v20 = vpack.c.bf16 %v173_v19, %v172_v18  ;;  %v174_v21 = vld [vmem:[%s1231_s3 + $0x50] sm:$0xff]  ;;  %v175_v22 = vld [vmem:[%s1231_s3 + $0x58] sm:$0xff]  ;;  %v176_v24 = vld [vmem:[%s1231_s3 + $0x60] sm:$0xff] }
  0x3b   :  { %777 = vmatprep.subr.bf16.mxu1 %v953_v0  ;;  %v790_v23 = vpack.c.bf16 %v175_v22, %v174_v21  ;;  %v177_v25 = vld [vmem:[%s1231_s3 + $0x68] sm:$0xff]  ;;  %v178_v27 = vld [vmem:[%s1231_s3 + $0x70] sm:$0xff]  ;;  %v179_v28 = vld [vmem:[%s1231_s3 + $0x78] sm:$0xff] }
  0x3c   :  { %629 = vmatmul.mubr.msk.f32.vlgmr.msra.gmra.mrb[0].mxu0 %vm89_vm1, %v79_v10  ;;  %v793_v26 = vpack.c.bf16 %v177_v25, %v176_v24  ;;  %v796_v29 = vpack.c.bf16 %v179_v28, %v178_v27  ;;  %v258_v30 = vld [vmem:[#allocation4] sm:$0xff]  ;;  %v259_v31 = vld [vmem:[#allocation4 + $0x8] sm:$0xff]  ;;  %v260_v32 = vld [vmem:[#allocation4 + $0x10] sm:$0xff] }
  0x3d   :  { %698 = vmatprep.mubr.msk.f32.mxu0 %vm954_vm0, %v955_v1  ;;  %v799_v33 = vpack.c.bf16 %v259_v31, %v258_v30  ;;  %v261_v34 = vld [vmem:[#allocation4 + $0x18] sm:$0xff]  ;;  %v262_v36 = vld [vmem:[#allocation4 + $0x20] sm:$0xff]  ;;  %v263_v37 = vld [vmem:[#allocation4 + $0x28] sm:$0xff] }
  0x3e   :  { %779 = vmatpush3.bf16.msra.mxu1 %v778_v11  ;;  %v802_v35 = vpack.c.bf16 %v261_v34, %v260_v32  ;;  %v805_v38 = vpack.c.bf16 %v263_v37, %v262_v36  ;;  %v264_v39 = vld [vmem:[#allocation4 + $0x30] sm:$0xff]  ;;  %v265_v40 = vld [vmem:[#allocation4 + $0x38] sm:$0xff]  ;;  %v266_v42 = vld [vmem:[#allocation4 + $0x40] sm:$0xff] }
  0x3f   :  { %780 = vmatprep.subr.bf16.mxu1 %v953_v0  ;;  %800 = vmatpush3.bf16.msra.mxu0 %v799_v33  ;;  %v808_v41 = vpack.c.bf16 %v265_v40, %v264_v39  ;;  %v267_v43 = vld [vmem:[#allocation4 + $0x48] sm:$0xff]  ;;  %v268_v45 = vld [vmem:[#allocation4 + $0x50] sm:$0xff]  ;;  %v269_v46 = vld [vmem:[#allocation4 + $0x58] sm:$0xff] }
  0x40   :  { %801 = vmatprep.subr.bf16.mxu0 %v953_v0  ;;  %v811_v44 = vpack.c.bf16 %v267_v43, %v266_v42  ;;  %v814_v47 = vpack.c.bf16 %v269_v46, %v268_v45  ;;  %v270_v48 = vld [vmem:[#allocation4 + $0x60] sm:$0xff]  ;;  %v271_v49 = vld [vmem:[#allocation4 + $0x68] sm:$0xff]  ;;  %v547_v51 = vld [vmem:[%s1230_s2] ss:$0 sm:$0xff] }
  0x41   :  { %v817_v50 = vpack.c.bf16 %v271_v49, %v270_v48  ;;  %v272_v56 = vld [vmem:[#allocation4 + $0x70] sm:$0xff]  ;;  %v273_v57 = vld [vmem:[#allocation4 + $0x78] sm:$0xff]  ;;  %v352_v59 = vld [vmem:[#allocation6] sm:$0xff] }
  0x42   :  { %782 = vmatpush3.bf16.msra.mxu1 %v781_v14  ;;  %v820_v58 = vpack.c.bf16 %v273_v57, %v272_v56  ;;  %v353_v60 = vld [vmem:[#allocation6 + $0x8] sm:$0xff]  ;;  %v354_v61 = vld [vmem:[#allocation6 + $0x10] sm:$0xff]  ;;  %v355_v63 = vld [vmem:[#allocation6 + $0x18] sm:$0xff] }
  0x43   :  { %783 = vmatprep.subr.bf16.mxu1 %v953_v0  ;;  %803 = vmatpush3.bf16.msra.mxu0 %v802_v35  ;;  %v823_v62 = vpack.c.bf16 %v353_v60, %v352_v59  ;;  %v826_v2 = vpack.c.bf16 %v355_v63, %v354_v61  ;;  %v356_v3 = vld [vmem:[#allocation6 + $0x20] sm:$0xff]  ;;  %v357_v4 = vld [vmem:[#allocation6 + $0x28] sm:$0xff]  ;;  %v358_v6 = vld [vmem:[#allocation6 + $0x30] sm:$0xff] }
  0x44   :  { %804 = vmatprep.subr.bf16.mxu0 %v953_v0  ;;  %v829_v5 = vpack.c.bf16 %v357_v4, %v356_v3  ;;  %v359_v7 = vld [vmem:[#allocation6 + $0x38] sm:$0xff]  ;;  %v360_v9 = vld [vmem:[#allocation6 + $0x40] sm:$0xff]  ;;  %v361_v10 = vld [vmem:[#allocation6 + $0x48] sm:$0xff] }
  0x45   :  { %v832_v8 = vpack.c.bf16 %v359_v7, %v358_v6  ;;  %v835_v11 = vpack.c.bf16 %v361_v10, %v360_v9  ;;  %v362_v12 = vld [vmem:[#allocation6 + $0x50] sm:$0xff]  ;;  %v363_v13 = vld [vmem:[#allocation6 + $0x58] sm:$0xff]  ;;  %v364_v15 = vld [vmem:[#allocation6 + $0x60] sm:$0xff] }
  0x46   :  { %785 = vmatpush3.bf16.msra.mxu1 %v784_v17  ;;  %v838_v14 = vpack.c.bf16 %v363_v13, %v362_v12  ;;  %v365_v16 = vld [vmem:[#allocation6 + $0x68] sm:$0xff]  ;;  %v549_v18 = vld [vmem:[%s1232_s4] ss:$0 sm:$0xff]  ;;  %v367_v24 = vld [vmem:[#allocation6 + $0x78] sm:$0xff] }
  0x47   :  { %786 = vmatprep.subr.bf16.mxu1 %v953_v0  ;;  %806 = vmatpush3.bf16.msra.mxu0 %v805_v38  ;;  %v841_v17 = vpack.c.bf16 %v365_v16, %v364_v15  ;;  %v447_v27 = vld [vmem:[%s1237_s9 + $0x8] sm:$0xff]  ;;  %v448_v28 = vld [vmem:[%s1237_s9 + $0x10] sm:$0xff]  ;;  %v450_v31 = vld [vmem:[%s1237_s9 + $0x20] sm:$0xff] }
  0x48   :  { %807 = vmatprep.subr.bf16.mxu0 %v953_v0  ;;  %v451_v32 = vld [vmem:[%s1237_s9 + $0x28] sm:$0xff]  ;;  %v452_v34 = vld [vmem:[%s1237_s9 + $0x30] sm:$0xff]  ;;  %v453_v35 = vld [vmem:[%s1237_s9 + $0x38] sm:$0xff] }
  0x49   :  { %v853_v33 = vpack.c.bf16 %v451_v32, %v450_v31  ;;  %v856_v36 = vpack.c.bf16 %v453_v35, %v452_v34  ;;  %v454_v37 = vld [vmem:[%s1237_s9 + $0x40] sm:$0xff]  ;;  %v455_v38 = vld [vmem:[%s1237_s9 + $0x48] sm:$0xff]  ;;  %v456_v40 = vld [vmem:[%s1237_s9 + $0x50] sm:$0xff] }
  0x4a   :  { %788 = vmatpush3.bf16.msra.mxu1 %v787_v20  ;;  %v859_v39 = vpack.c.bf16 %v455_v38, %v454_v37  ;;  %v458_v43 = vld [vmem:[%s1237_s9 + $0x60] sm:$0xff] }
  0x4b   :  { %789 = vmatprep.subr.bf16.mxu1 %v953_v0  ;;  %809 = vmatpush3.bf16.msra.mxu0 %v808_v41  ;;  %v457_v41 = vld [vmem:[%s1237_s9 + $0x58] sm:$0xff]  ;;  %v550_v46 = vld [vmem:[%s1234_s6] ss:$0 sm:$0xff] }
  0x4c   :  { %810 = vmatprep.subr.bf16.mxu0 %v953_v0  ;;  %v862_v42 = vpack.c.bf16 %v457_v41, %v456_v40 }
  0x4e   :  { %791 = vmatpush3.bf16.msra.mxu1 %v790_v23  ;;  %v366_v23 = vld [vmem:[#allocation6 + $0x70] sm:$0xff] }
  0x4f   :  { %792 = vmatprep.subr.bf16.mxu1 %v953_v0  ;;  %812 = vmatpush3.bf16.msra.mxu0 %v811_v44  ;;  %v844_v25 = vpack.c.bf16 %v367_v24, %v366_v23  ;;  %v459_v44 = vld [vmem:[%s1237_s9 + $0x68] sm:$0xff] }
  0x50   :  { %813 = vmatprep.subr.bf16.mxu0 %v953_v0  ;;  %v865_v45 = vpack.c.bf16 %v459_v44, %v458_v43 }
  0x52   :  { %794 = vmatpush3.bf16.msra.mxu1 %v793_v26  ;;  %v446_v26 = vld [vmem:[%s1237_s9] sm:$0xff] }
  0x53   :  { %795 = vmatprep.subr.bf16.mxu1 %v953_v0  ;;  %815 = vmatpush3.bf16.msra.mxu0 %v814_v47 }
  0x54   :  { %816 = vmatprep.subr.bf16.mxu0 %v953_v0 }
  0x56   :  { %797 = vmatpush3.bf16.msra.mxu1 %v796_v29  ;;  %v847_v29 = vpack.c.bf16 %v447_v27, %v446_v26 }
  0x57   :  { %822 = vmatprep.subr.bf16.mxu1 %v953_v0  ;;  %818 = vmatpush3.bf16.msra.mxu0 %v817_v50 }
  0x58   :  { %819 = vmatprep.subr.bf16.mxu0 %v953_v0 }
  0x5b   :  { %821 = vmatpush3.bf16.msra.mxu0 %v820_v58  ;;  %v552_v58 = vld [vmem:[%s1238_s10] ss:$0 sm:$0xff] }
  0x5c   :  { %846 = vmatprep.subr.bf16.mxu0 %v953_v0 }
 0x10f   :  { %v159_v52 = vpop.f32.mrb[0].mxu0 }
 0x110   :  { %v160_v53 = vadd.f32 %v547_v51, %v159_v52  ;;  %v630_v54 = vpop.f32.mrb[1].mxu0  ;;  %v460_v51 = vld [vmem:[%s1237_s9 + $0x70] sm:$0xff]  ;;  %v461_v52 = vld [vmem:[%s1237_s9 + $0x78] sm:$0xff] }
 0x112   :  { %v163_v55 = vmax.f32 %v160_v53, 0.0  ;;  %v868_v53 = vpack.c.bf16 %v461_v52, %v460_v51 }
 0x114   :  { %664 = vmatmul.mubr.f32.vlgmr.msra.gmra.mrb[0].mxu1 %v163_v55 }
 0x115   :  { %733 = vmatprep.mubr.msk.f32.mxu1 %vm954_vm0, %v955_v1  ;;  %824 = vmatpush3.bf16.msra.mxu1 %v823_v62 }
 0x116   :  { %825 = vmatprep.subr.bf16.mxu1 %v953_v0 }
 0x119   :  { %827 = vmatpush3.bf16.msra.mxu1 %v826_v2 }
 0x11a   :  { %828 = vmatprep.subr.bf16.mxu1 %v953_v0 }
 0x11d   :  { %830 = vmatpush3.bf16.msra.mxu1 %v829_v5 }
 0x11e   :  { %831 = vmatprep.subr.bf16.mxu1 %v953_v0 }
 0x121   :  { %833 = vmatpush3.bf16.msra.mxu1 %v832_v8 }
 0x122   :  { %834 = vmatprep.subr.bf16.mxu1 %v953_v0 }
 0x125   :  { %836 = vmatpush3.bf16.msra.mxu1 %v835_v11 }
 0x126   :  { %837 = vmatprep.subr.bf16.mxu1 %v953_v0 }
 0x129   :  { %839 = vmatpush3.bf16.msra.mxu1 %v838_v14 }
 0x12a   :  { %840 = vmatprep.subr.bf16.mxu1 %v953_v0 }
 0x12d   :  { %842 = vmatpush3.bf16.msra.mxu1 %v841_v17 }
 0x12e   :  { %843 = vmatprep.subr.bf16.mxu1 %v953_v0 }
 0x131   :  { %845 = vmatpush3.bf16.msra.mxu1 %v844_v25 }
 0x1e7   :  { %v253_v19 = vpop.f32.mrb[0].mxu1 }
 0x1e8   :  { %v254_v20 = vadd.f32 %v549_v18, %v253_v19  ;;  %v665_v21 = vpop.f32.mrb[1].mxu1 }
 0x1ea   :  { %v257_v22 = vmax.f32 %v254_v20, 0.0 }
 0x1ec   :  { %699 = vmatmul.mubr.f32.vlgmr.msra.gmra.mrb[2].mxu0 %v257_v22 }
 0x1ed   :  { %768 = vmatprep.mubr.msk.f32.mxu0 %vm954_vm0, %v955_v1  ;;  %v449_v1 = vld [vmem:[%s1237_s9 + $0x18] sm:$0xff]  ;;  %848 = vmatpush3.bf16.msra.mxu0 %v847_v29 }
 0x1ee   :  { %v850_v30 = vpack.c.bf16 %v449_v1, %v448_v28  ;;  %849 = vmatprep.subr.bf16.mxu0 %v953_v0 }
 0x1f1   :  { %851 = vmatpush3.bf16.msra.mxu0 %v850_v30 }
 0x1f2   :  { %852 = vmatprep.subr.bf16.mxu0 %v953_v0 }
 0x1f5   :  { %854 = vmatpush3.bf16.msra.mxu0 %v853_v33 }
 0x1f6   :  { %855 = vmatprep.subr.bf16.mxu0 %v953_v0 }
 0x1f9   :  { %857 = vmatpush3.bf16.msra.mxu0 %v856_v36 }
 0x1fa   :  { %858 = vmatprep.subr.bf16.mxu0 %v953_v0 }
 0x1fd   :  { %860 = vmatpush3.bf16.msra.mxu0 %v859_v39 }
 0x1fe   :  { %861 = vmatprep.subr.bf16.mxu0 %v953_v0 }
 0x201   :  { %863 = vmatpush3.bf16.msra.mxu0 %v862_v42 }
 0x202   :  { %864 = vmatprep.subr.bf16.mxu0 %v953_v0 }
 0x205   :  { %866 = vmatpush3.bf16.msra.mxu0 %v865_v45 }
 0x206   :  { %867 = vmatprep.subr.bf16.mxu0 %v953_v0  ;;  %v551_v0 = vld [vmem:[%s1236_s8] ss:$0 sm:$0xff] }
 0x209   :  { %869 = vmatpush3.bf16.msra.mxu0 %v868_v53 }
 0x2bf   :  { %v347_v47 = vpop.f32.mrb[2].mxu0 }
 0x2c0   :  { %v348_v48 = vadd.f32 %v550_v46, %v347_v47  ;;  %v700_v49 = vpop.f32.mrb[3].mxu0 }
 0x2c2   :  { %v351_v50 = vmax.f32 %v348_v48, 0.0 }
 0x2c4   :  { %734 = vmatmul.mubr.f32.vlgmr.msra.gmra.mrb[2].mxu1 %v351_v50 }
 0x397   :  { %v441_v54 = vpop.f32.mrb[2].mxu1 }
 0x398   :  { %v442_v55 = vadd.f32 %v551_v0, %v441_v54  ;;  %v735_v56 = vpop.f32.mrb[3].mxu1 }
 0x39a   :  { %v445_v57 = vmax.f32 %v442_v55, 0.0 }
 0x39c   :  { %769 = vmatmul.mubr.f32.vlgmr.msra.gmra.mrb[4].mxu0 %v445_v57 }
 0x46f   :  { %v535_v59 = vpop.f32.mrb[4].mxu0 }
 0x470   :  { %v536_v60 = vadd.f32 %v552_v58, %v535_v59  ;;  %v770_v61 = vpop.f32.mrb[5].mxu0 }
 0x472   :  { %540 = vst.msk [vmem:[%s1239_s11] sm:$0xff] %vm539_vm2, %v536_v60 }
 0x473   :  { %545 = vsyncpa [#allocation3], 1 }
 0x474   :  { %546 = vsyncpa [#allocation5], 1 }

</bundles_post_ra>
